<compile_context>
chip_gen: v5e
topology: v5e:2x2
jax: 0.10.0
libtpu: 0.0.40
codegen_flags: <defaults>
</compile_context>

<pallas_src>
import functools

import jax
import jax.numpy as jnp
from jax import lax
from jax.experimental import pallas as pl
from jax.experimental.pallas import tpu as pltpu

_LANES = 128
_SUBLANES = 8
_DATA_CHUNK_ROWS = 64   # 2 streams * 8 vregs/chunk  -> far under the 64-vreg budget
_PHY_CHUNK_ROWS = 64    # 4 streams * 8 vregs/chunk + temps -> still within budget
_CHUNK_UNROLL = 4


def _round_up(x, m):
    return ((x + m - 1) // m) * m


def _flatten(x, input_dtype):
    flat = jnp.ravel(jnp.asarray(x))
    if input_dtype is not None and flat.dtype != jnp.dtype(input_dtype):
        # NOTE: this cast is itself an HBM read+write; only worth it if the producer
        # fuses it / already emits `input_dtype`. Default (None) transports as-is.
        flat = flat.astype(input_dtype)
    return flat


# ---------------------------------------------------------------------------
# Kernel factories (all tiling/masking constants baked in at trace time)
# ---------------------------------------------------------------------------
def _make_data_kernel(*, block_rows, chunk_rows, valid_rows, nb_per_core, need_mask):
    """sum((preds - targets)^2) over a (rows,128) lane-dense slab, chunked."""
    n_chunks = block_rows // chunk_rows

    def kernel(p_ref, t_ref, acc_ref):
        step = pl.program_id(1)

        @pl.when(step == 0)
        def _init():
            acc_ref[...] = jnp.zeros_like(acc_ref)

        # Logical row origin of this block (used only for tail masking).
        row0 = (pl.program_id(0) * nb_per_core + step) * block_rows

        def body(k, acc):
            r = pl.multiple_of(k * chunk_rows, chunk_rows)
            sl = pl.ds(r, chunk_rows)
            d = p_ref[sl, :].astype(jnp.float32) - t_ref[sl, :].astype(jnp.float32)
            sq = d * d
            if need_mask:
                ridx = row0 + r + lax.broadcasted_iota(
                    jnp.int32, (chunk_rows, _LANES), 0)
                sq = jnp.where(ridx < valid_rows, sq, 0.0)
            return acc + sq.reshape(chunk_rows // _SUBLANES, _SUBLANES,
                                    _LANES).sum(axis=0)

        acc = lax.fori_loop(0, n_chunks, body,
                            jnp.zeros((_SUBLANES, _LANES), jnp.float32),
                            unroll=min(_CHUNK_UNROLL, n_chunks))
        acc_ref[...] += acc

    return kernel


def _make_phy_kernel(*, block_rows, chunk_rows, valid_rows, nb_per_core, need_mask,
                     beta_over_npop, gamma, n_pop):
    """sum(res_I^2 + res_R^2) of the SIR residuals over lane-dense slabs, chunked."""
    n_chunks = block_rows // chunk_rows
    b = float(beta_over_npop)    # baked-in static hyperparameters (review item 8)
    g = float(gamma)
    npf = float(n_pop)

    def kernel(i_ref, r_ref, di_ref, dr_ref, acc_ref):
        step = pl.program_id(1)

        @pl.when(step == 0)
        def _init():
            acc_ref[...] = jnp.zeros_like(acc_ref)

        row0 = (pl.program_id(0) * nb_per_core + step) * block_rows

        def body(k, acc):
            r = pl.multiple_of(k * chunk_rows, chunk_rows)
            sl = pl.ds(r, chunk_rows)
            I = i_ref[sl, :].astype(jnp.float32)
            R = r_ref[sl, :].astype(jnp.float32)
            dI = di_ref[sl, :].astype(jnp.float32)
            dR = dr_ref[sl, :].astype(jnp.float32)
            gI = g * I                               # CSE'd: used by res_I and res_R
            res_I = dI - (b * (npf - I - R) * I - gI)
            res_R = dR - gI
            sq = res_I * res_I + res_R * res_R
            if need_mask:
                ridx = row0 + r + lax.broadcasted_iota(
                    jnp.int32, (chunk_rows, _LANES), 0)
                sq = jnp.where(ridx < valid_rows, sq, 0.0)
            return acc + sq.reshape(chunk_rows // _SUBLANES, _SUBLANES,
                                    _LANES).sum(axis=0)

        acc = lax.fori_loop(0, n_chunks, body,
                            jnp.zeros((_SUBLANES, _LANES), jnp.float32),
                            unroll=min(_CHUNK_UNROLL, n_chunks))
        acc_ref[...] += acc

    return kernel


# ---------------------------------------------------------------------------
# Pallas reduction driver
# ---------------------------------------------------------------------------
def _sum_sq_pallas(make_kernel, streams, chunk_rows, block_rows, num_partials):
    """Pipelined reduction over equal-length flat arrays (lengths multiple of 128).

    Returns the f32 scalar sum produced by the kernel built by `make_kernel`.
    """
    n = streams[0].shape[0]
    rows = n // _LANES
    slabs = [s.reshape(rows, _LANES) for s in streams]   # free reshape (no copy)

    # Block size: <= rows, multiple of chunk_rows (itself a multiple of 8, so the
    # (8,128)/(16,128) f32/bf16 tiling constraints are satisfied).
    block_rows_eff = max(chunk_rows, (min(int(block_rows), rows) // chunk_rows)
                         * chunk_rows)
    nb_total = -(-rows // block_rows_eff)
    nb_per_core = -(-nb_total // num_partials)
    # Mask needed whenever the grid over-covers the slab (partial final block and/or
    # redundant clamped blocks from an uneven per-core split).
    need_mask = (num_partials * nb_per_core * block_rows_eff) != rows

    kernel = make_kernel(block_rows=block_rows_eff, chunk_rows=chunk_rows,
                         valid_rows=rows, nb_per_core=nb_per_core,
                         need_mask=need_mask)

    if num_partials * nb_per_core == nb_total:
        in_index = lambda c, i: (c * nb_per_core + i, 0)
    else:
        # Clamp so redundant trailing blocks never issue an out-of-bounds DMA; their
        # contribution is masked to zero in-kernel (row0 >= valid_rows).
        in_index = lambda c, i: (jnp.minimum(c * nb_per_core + i, nb_total - 1), 0)

    in_spec = pl.BlockSpec((block_rows_eff, _LANES), in_index)
    out_spec = pl.BlockSpec((_SUBLANES, _LANES), lambda c, i: (c, 0))

    itemsize = max(s.dtype.itemsize for s in slabs)
    block_bytes = block_rows_eff * _LANES * itemsize
    vmem_limit = int(max(2 * len(slabs) * block_bytes + (4 << 20), 32 << 20))

    dims = ((pltpu.CORE_PARALLEL if num_partials > 1 else pltpu.ARBITRARY),
            pltpu.ARBITRARY)

    acc = pl.pallas_call(
        kernel,
        out_shape=jax.ShapeDtypeStruct((num_partials * _SUBLANES, _LANES),
                                       jnp.float32),
        grid=(num_partials, nb_per_core),
        in_specs=[in_spec] * len(slabs),
        out_specs=out_spec,
        compiler_params=pltpu.CompilerParams(
            dimension_semantics=dims, vmem_limit_bytes=vmem_limit),
    )(*slabs)
    # Tiny cross-lane reduce of the (num_partials*8, 128) partial-sum slab in XLA.
    # NOTE: f32 per-lane partial sums (>=1024-way split) keep accumulation error small
    # up to ~1e8 elements; beyond that consider per-block partial outputs.
    return jnp.sum(acc)


# ---------------------------------------------------------------------------
# Loss wrappers
# ---------------------------------------------------------------------------
def _data_loss(preds, targets, *, input_dtype, block_rows, num_partials,
               min_pallas_elems):
    p = _flatten(preds, input_dtype)
    t = _flatten(targets, input_dtype)
    n = p.shape[0]

    if n < min_pallas_elems or n < _LANES * _DATA_CHUNK_ROWS:
        d = p.astype(jnp.float32) - t.astype(jnp.float32)
        return jnp.sum(d * d) * jnp.float32(1.0 / n)

    main = (n // _LANES) * _LANES
    tail = n - main
    if tail == 0:
        pm, tm = p, t                       # zero-copy slab path
    else:
        # TODO(synk): this prefix slice materializes one copy of the main region;
        # unavoidable without padding when n % 128 != 0.
        pm, tm = p[:main], t[:main]
    s = _sum_sq_pallas(_make_data_kernel, [pm, tm],
                       _DATA_CHUNK_ROWS, block_rows, num_partials)
    if tail:
        d = p[main:].astype(jnp.float32) - t[main:].astype(jnp.float32)
        s = s + jnp.sum(d * d)
    return s * jnp.float32(1.0 / n)


def _phy_loss(preds_I, preds_R, dI_dt, dR_dt, beta, gamma, n_pop, *,
              input_dtype, block_rows, num_partials, min_pallas_elems):
    I = _flatten(preds_I, input_dtype)
    R = _flatten(preds_R, input_dtype)
    dI = _flatten(dI_dt, input_dtype)
    dR = _flatten(dR_dt, input_dtype)
    n = I.shape[0]

    def xla_res_sq(Ix, Rx, dIx, dRx):
        If = Ix.astype(jnp.float32)
        Rf = Rx.astype(jnp.float32)
        gI = jnp.float32(gamma) * If
        res_I = dIx.astype(jnp.float32) - (
            jnp.float32(beta / n_pop) * (jnp.float32(n_pop) - If - Rf) * If - gI)
        res_R = dRx.astype(jnp.float32) - gI
        return jnp.sum(res_I * res_I + res_R * res_R)

    if n < min_pallas_elems or n < _LANES * _PHY_CHUNK_ROWS:
        return xla_res_sq(I, R, dI, dR) * jnp.float32(1.0 / n)

    main = (n // _LANES) * _LANES
    tail = n - main
    if tail == 0:
        streams = [I, R, dI, dR]            # zero-copy slab path
    else:
        streams = [I[:main], R[:main], dI[:main], dR[:main]]
    make_kernel = functools.partial(_make_phy_kernel, beta_over_npop=beta / n_pop,
                                    gamma=gamma, n_pop=n_pop)
    s = _sum_sq_pallas(make_kernel, streams,
                       _PHY_CHUNK_ROWS, block_rows, num_partials)
    if tail:
        s = s + xla_res_sq(I[main:], R[main:], dI[main:], dR[main:])
    return s * jnp.float32(1.0 / n)


def phy_loss_pallas(preds, targets, preds_I=None, preds_R=None, dI_dt=None, dR_dt=None,
                    *, beta=0.0, gamma=0.0, n_pop=1.0, with_phy=True,
                    block_rows=4096, num_partials=1, input_dtype=None,
                    min_pallas_elems=128 * 1024):
    """Returns (data_loss, phy_loss) as float32 scalars.

    block_rows: rows of 128 lanes per grid step per stream (default 4096 ~= 2 MiB/stream
      f32; double-buffered 4-stream kernel stays well under v7x's 64 MiB VMEM).
    num_partials: 1 on single-TensorCore chips (v5e/v6e, default). Set 2 on v7x to
      split the row-block axis across both TensorCores via CORE_PARALLEL.
    input_dtype: None = transport inputs in their existing dtype (zero-copy). Set
      jnp.bfloat16 to halve HBM bytes ONLY when upstream already produces bf16 (or the
      cast fuses into the producer); math is always f32 in-kernel.
    beta/gamma/n_pop must be static Python scalars (module hyperparameters).
    """
    data_loss = _data_loss(preds, targets, input_dtype=input_dtype,
                           block_rows=block_rows, num_partials=num_partials,
                           min_pallas_elems=min_pallas_elems)
    if not with_phy:
        return data_loss, jnp.float32(0.0)
    phy_loss = _phy_loss(preds_I, preds_R, dI_dt, dR_dt,
                         float(beta), float(gamma), float(n_pop),
                         input_dtype=input_dtype, block_rows=block_rows,
                         num_partials=num_partials,
                         min_pallas_elems=min_pallas_elems)
    return data_loss, phy_loss


# ---------------------------------------------------------------------------
# Self-test
# ---------------------------------------------------------------------------
if __name__ == "__main__":
    key = jax.random.PRNGKey(0)
    k1, k2 = jax.random.split(key, 2)

    beta, gamma = 0.3, 0.1
    n_pop = 1000.0

    def run_case(N, block_rows):
        t = jnp.linspace(0.0, 1.0, N, dtype=jnp.float32).reshape(N, 1)

        def model_I(tt):
            return 0.10 * n_pop * jax.nn.sigmoid(2.0 * tt - 0.5)

        def model_R(tt):
            return 0.05 * n_pop * jax.nn.sigmoid(1.5 * tt - 1.0)

        preds_I = model_I(t)
        preds_R = model_R(t)
        # torch.autograd.grad(preds_*, t, grad_outputs=ones) for an elementwise map
        # == elementwise derivative == forward-mode jvp with a ones tangent.
        _, dI_dt = jax.jvp(model_I, (t,), (jnp.ones_like(t),))
        _, dR_dt = jax.jvp(model_R, (t,), (jnp.ones_like(t),))

        preds = jax.random.normal(k1, (N, 1), dtype=jnp.float32)
        targets = jax.random.normal(k2, (N, 1), dtype=jnp.float32)

        # TODO(synk): data-dependent raise from the PyTorch module — host-side only.
        S_host = n_pop - preds_I - preds_R
        if bool(jnp.any(S_host <= 0)):
            raise Exception(f"[Error] (PhyLoss::phyLoss_): S less than 0.0\n{S_host}")

        data_loss, phy_loss = phy_loss_pallas(
            preds, targets, preds_I, preds_R, dI_dt, dR_dt,
            beta=beta, gamma=gamma, n_pop=n_pop, with_phy=True,
            block_rows=block_rows, min_pallas_elems=1024)
        jax.block_until_ready((data_loss, phy_loss))

        # Pure-JAX reference.
        ref_data = jnp.mean((preds - targets) ** 2)
        S = n_pop - preds_I - preds_R
        res_I = dI_dt - (beta * S * preds_I / n_pop - gamma * preds_I)
        res_R = dR_dt - gamma * preds_I
        ref_phy = jnp.mean(res_I ** 2) + jnp.mean(res_R ** 2)

        assert jnp.allclose(data_loss, ref_data, rtol=1e-4, atol=1e-5), \
            (N, data_loss, ref_data)
        assert jnp.allclose(phy_loss, ref_phy, rtol=1e-3, atol=1e-3), \
            (N, phy_loss, ref_phy)
        return preds, targets, ref_data

    # Case 1: size divisible by 128 -> zero-copy slab path, multi-step grid (1, 8).
    preds, targets, ref_data = run_case(N=131072, block_rows=128)
    # Case 2: ragged size -> in-kernel row mask + XLA lane-tail path.
    run_case(N=10000, block_rows=32)

    # with_phy=False path (data-only kernel).
    data_only, phy_zero = phy_loss_pallas(
        preds, targets, beta=beta, gamma=gamma, n_pop=n_pop, with_phy=False,
        block_rows=128, min_pallas_elems=1024)
    jax.block_until_ready((data_only, phy_zero))
    assert jnp.allclose(data_only, ref_data, rtol=1e-4, atol=1e-5), (data_only, ref_data)
    assert float(phy_zero) == 0.0

    # Optional bf16 transport (math stays f32 in-kernel; looser tolerance).
    data_bf16, _ = phy_loss_pallas(
        preds, targets, with_phy=False, block_rows=128, min_pallas_elems=1024,
        input_dtype=jnp.bfloat16)
    jax.block_until_ready(data_bf16)
    assert jnp.allclose(data_bf16, ref_data, rtol=5e-2, atol=5e-2), (data_bf16, ref_data)

    print("KERNEL_OK")
</pallas_src>

<mosaic_0001>
module attributes {stable_mosaic.version = 11 : i64} {
  func.func @kernel(%arg0: i32, %arg1: i32, %arg2: memref<128x128xf32, #tpu.memory_space<vmem>>, %arg3: memref<128x128xf32, #tpu.memory_space<vmem>>, %arg4: memref<8x128xf32, #tpu.memory_space<vmem>>) attributes {dimension_semantics = [#tpu.dimension_semantics<arbitrary>, #tpu.dimension_semantics<arbitrary>], iteration_bounds = array<i64: 1, 8>, scalar_prefetch = 0 : i64, scratch_operands = 0 : i64, tpu.core_type = #tpu.core_type<tc>, window_params = [{transform_indices = @transform_0, window_bounds = array<i64: 128, 128>}, {transform_indices = @transform_1, window_bounds = array<i64: 128, 128>}, {transform_indices = @transform_2, window_bounds = array<i64: 8, 128>}]} {
    %c0_i32 = arith.constant 0 : i32
    %0 = arith.cmpi eq, %arg1, %c0_i32 : i32
    %1 = arith.extui %0 : i1 to i32
    %c0_i32_0 = arith.constant 0 : i32
    %2 = arith.cmpi ne, %1, %c0_i32_0 : i32
    scf.if %2 {
      %cst_12 = arith.constant 0.000000e+00 : f32
      %29 = vector.broadcast %cst_12 : f32 to vector<8x128xf32>
      %c0_13 = arith.constant 0 : index
      %c0_14 = arith.constant 0 : index
      %30 = vector.load %arg4[%c0_13, %c0_14] : memref<8x128xf32, #tpu.memory_space<vmem>>, vector<8x128xf32>
      tpu.vector_store %arg4[%c0_13, %c0_14], %29 {strides = array<i32>} : memref<8x128xf32, #tpu.memory_space<vmem>>, vector<8x128xf32>,
    } else {
    }
    %cst = arith.constant 0.000000e+00 : f32
    %3 = vector.broadcast %cst : f32 to vector<8x128xf32>
    %c0_i32_1 = arith.constant 0 : i32
    %c64_i32 = arith.constant 64 : i32
    %4 = arith.muli %c0_i32_1, %c64_i32 : i32
    %5 = tpu.assume_multiple %4, 64 : i32
    %6 = arith.index_cast %5 : i32 to index
    %c0 = arith.constant 0 : index
    %7 = vector.load %arg2[%6, %c0] : memref<128x128xf32, #tpu.memory_space<vmem>>, vector<64x128xf32>
    %8 = arith.index_cast %5 : i32 to index
    %c0_2 = arith.constant 0 : index
    %9 = vector.load %arg3[%8, %c0_2] : memref<128x128xf32, #tpu.memory_space<vmem>>, vector<64x128xf32>
    %10 = arith.subf %7, %9 : vector<64x128xf32>
    %11 = arith.mulf %10, %10 : vector<64x128xf32>
    %12 = vector.shape_cast %11 : vector<64x128xf32> to vector<8x8x128xf32>
    %cst_3 = arith.constant dense<0.000000e+00> : vector<8x128xf32>
    %13 = vector.multi_reduction <add>, %12, %cst_3 [0] : vector<8x8x128xf32> to vector<8x128xf32>
    %14 = arith.addf %3, %13 : vector<8x128xf32>
    %c1_i32 = arith.constant 1 : i32
    %c64_i32_4 = arith.constant 64 : i32
    %15 = arith.muli %c1_i32, %c64_i32_4 : i32
    %16 = tpu.assume_multiple %15, 64 : i32
    %17 = arith.index_cast %16 : i32 to index
    %c0_5 = arith.constant 0 : index
    %18 = vector.load %arg2[%17, %c0_5] : memref<128x128xf32, #tpu.memory_space<vmem>>, vector<64x128xf32>
    %19 = arith.index_cast %16 : i32 to index
    %c0_6 = arith.constant 0 : index
    %20 = vector.load %arg3[%19, %c0_6] : memref<128x128xf32, #tpu.memory_space<vmem>>, vector<64x128xf32>
    %21 = arith.subf %18, %20 : vector<64x128xf32>
    %22 = arith.mulf %21, %21 : vector<64x128xf32>
    %23 = vector.shape_cast %22 : vector<64x128xf32> to vector<8x8x128xf32>
    %cst_7 = arith.constant dense<0.000000e+00> : vector<8x128xf32>
    %24 = vector.multi_reduction <add>, %23, %cst_7 [0] : vector<8x8x128xf32> to vector<8x128xf32>
    %25 = arith.addf %14, %24 : vector<8x128xf32>
    %c2_i32 = arith.constant 2 : i32
    %c0_8 = arith.constant 0 : index
    %c0_9 = arith.constant 0 : index
    %26 = vector.load %arg4[%c0_8, %c0_9] : memref<8x128xf32, #tpu.memory_space<vmem>>, vector<8x128xf32>
    %27 = arith.addf %26, %25 : vector<8x128xf32>
    %c0_10 = arith.constant 0 : index
    %c0_11 = arith.constant 0 : index
    %28 = vector.load %arg4[%c0_10, %c0_11] : memref<8x128xf32, #tpu.memory_space<vmem>>, vector<8x128xf32>
    tpu.vector_store %arg4[%c0_10, %c0_11], %27 {strides = array<i32>} : memref<8x128xf32, #tpu.memory_space<vmem>>, vector<8x128xf32>,
    return
  }
  func.func @transform_0(%arg0: i32, %arg1: i32) -> (i32, i32) {
    %c8_i32 = arith.constant 8 : i32
    %0 = arith.muli %arg0, %c8_i32 : i32
    %1 = arith.addi %0, %arg1 : i32
    %c0_i32 = arith.constant 0 : i32
    %c0_i32_0 = arith.constant 0 : i32
    return %1, %c0_i32 : i32, i32
  }
  func.func @transform_1(%arg0: i32, %arg1: i32) -> (i32, i32) {
    %c8_i32 = arith.constant 8 : i32
    %0 = arith.muli %arg0, %c8_i32 : i32
    %1 = arith.addi %0, %arg1 : i32
    %c0_i32 = arith.constant 0 : i32
    %c0_i32_0 = arith.constant 0 : i32
    return %1, %c0_i32 : i32, i32
  }
  func.func @transform_2(%arg0: i32, %arg1: i32) -> (i32, i32) {
    %c0_i32 = arith.constant 0 : i32
    %c0_i32_0 = arith.constant 0 : i32
    return %arg0, %c0_i32 : i32, i32
  }
}

</mosaic_0001>

<bundles_post_ra>
// kernel: tpu_custom_call.1
= control target key start
LH: loop header
LB: loop body
LE: loop exit
PB: predicated region body
PF: predicated region fallthrough
CT: control target
= control target key end

     0   :  { %7 = vsyncpa [#allocation3], 0  ;;  %s837_s0 = inlined_call_operand.hbm [shape: f32[1024,128], index: 0, kind: input, shape index: {}]   ;;  %s838_s1 = inlined_call_operand.hbm [shape: f32[1024,128], index: 1, kind: input, shape index: {}]   ;;  %s839_s2 = inlined_call_operand.hbm [shape: f32[8,128], index: 2, kind: output, shape index: {}]  }
   0x1   :  { %9 = vsyncpa [#allocation3 + $0x1], 0 }
   0x2   :  { %10 = vsyncpa [#allocation6], 0 }
   0x3   :  { %12 = vsyncpa [#allocation6 + $0x1], 0 }
   0x4   :  { %13 = vsyncpa [#allocation4], 0  ;;  %s690_s9 = smov 0   ;;  %s692_s10 = smov 0  }
   0x5   :  { %s694_s11 = smov 0   ;;  %s696_s12 = smov 0  }
   0x6   :  { %s698_s13 = smov 0   ;;  %s700_s14 = smov 0  }
   0x7 LB: > { %s418_s15 = sadd.s32 4294967295, %s669_s14   ;;  %s28_s16 = sadd.s32 1, %s665_s13  ;;  %s669_s14 = sphi %s700_s14, %s19_s14   ;;  %s665_s13 = sphi %s698_s13, %s847_s13   ;;  %s661_s12 = sphi %s696_s12, %s846_s12   ;;  %s657_s11 = sphi %s694_s11, %s845_s11   ;;  %s653_s10 = sphi %s692_s10, %s844_s10   ;;  %s649_s9 = sphi %s690_s9, %s843_s9  }
   0x8   : > { %p29_p0 = scmp.ge.s32.totalorder %s28_s16, 8  ;;  %s42_s17 = sadd.s32 1, %s657_s11 }
   0x9   : > { %p49_p1 = scmp.ne.s32.totalorder %s657_s11, %s653_s10  ;;  %p50_p2 = scmp.eq.s32.totalorder %s669_s14, 0 }
   0xa   : > { %s849_s16 = smov (%p29_p0, %s28_s16), 0  ;;  %p55_p4 = scmp.ne.s32.totalorder %s653_s10, %s649_s9 }
   0xb   : > { %p726_p3 = por %p50_p2, %p49_p1  ;;  %s39_s19 = ssub.s32 %s665_s13, %s849_s16 }
   0xc   : > { %p56_p5 = scmp.eq.s32.totalorder %s418_s15, 0  ;;  %p40_p6 = scmp.eq.s32.totalorder %s39_s19, 0 }
   0xd   : > { %p468_p8 = scmp.lt.s32.totalorder %s669_s14, 8  ;;  %s744_s22 = sand.u32 1, %s657_s11  }
   0xe   : > { %p735_p7 = por %p56_p5, %p55_p4  ;;  %s451_s23 = sshll.u32 %s665_s13, 7 }
   0xf   : > { %s741_s21 = scalar_select %p40_p6, %s657_s11, %s42_s17  }
  0x10   : > { %s421_s24 = sshll.u32 %s744_s22, 7  ;;  %s146_s27 = scalar_lea.hbm %s837_s0, %s451_s23 }
  0x11   : > { %s147_s28 = sshll.u32 %s146_s27, 4  ;;  %s139_s29 = scalar_lea.vmem [#allocation2], %s421_s24  ;;  %s148_s28 = int_to_ptr.hbm [resolvable:$true] %s147_s28 }
  0x12   : > { %s149_s30 = sshll.u32 %s139_s29, 4  ;;  %p753_p9 = pnand %p468_p8, %p726_p3  ;;  %s150_s30 = int_to_ptr.vmem [resolvable:$true] %s149_s30 }
  0x13   : > { %p427_p10 = scmp.ge.s32.totalorder %s669_s14, 1  ;;  %p181_p11 = scmp.lt.s32.totalorder %s669_s14, 9 }
  0x14   : > { %s136_s4 = scalar_lea.sflag [#allocation3], %s744_s22  ;;  %s671_s5 = smov 128  }
  0x15   : > { %s672_s6 = smov 8   ;;  %p182_p12 = pnand %p427_p10, %p181_p11 }
  0x16   : > { %464 = dma.hbm_to_vmem [thread:$0]  (!%p753_p9), %s148_s28, 2048, %s150_s30, %s136_s4, %s671_s5, %s671_s5, %s672_s6  }
  0x17   : > { %s170_s9 = scalar_lea.hbm %s838_s1, %s451_s23  ;;  %s163_s18 = scalar_lea.vmem [#allocation5], %s421_s24 }
  0x18   : > { %s171_s17 = sshll.u32 %s170_s9, 4  ;;  %s173_s19 = sshll.u32 %s163_s18, 4  ;;  %s172_s17 = int_to_ptr.hbm [resolvable:$true] %s171_s17  ;;  %s174_s19 = int_to_ptr.vmem [resolvable:$true] %s173_s19 }
  0x19   : > { %s160_s25 = scalar_lea.sflag [#allocation6], %s744_s22  ;;  %185 = sbr.rel (%p182_p12) target bundleno = 76 (0x4c), region = 28 }
  0x1a   : > { %467 = dma.hbm_to_vmem [thread:$0]  (!%p753_p9), %s172_s17, 2048, %s174_s19, %s160_s25, %s671_s5, %s671_s5, %s672_s6  }
  0x1b   : > { %s187_s26 = sand.u32 (!%p182_p12), 1, %s653_s10  }
  0x1c   : > { %s428_s27 = sshll.u32 (!%p182_p12), %s187_s26, 7  ;;  %s188_s29 = scalar_lea.sflag (!%p182_p12), [#allocation3], %s187_s26 }
  0x1d   : > { %s769_s28 = scalar_lea.vmem (!%p182_p12), [#allocation2], %s428_s27 }
  0x1e   : > { %636 = dma.done.wait (%p735_p7), %s188_s29, 2048  }
  0x1f   : > { %638 = vsyncadd (%p735_p7), %s188_s29, 4294965248  ;;  %s198_s23 = scalar_lea.sflag [#allocation6], %s187_s26  ;;  %s775_s24 = scalar_lea.vmem [#allocation5], %s428_s27 }
  0x20   : > { %640 = dma.done.wait (%p735_p7), %s198_s23, 2048  }
  0x21   : > { %642 = vsyncadd (%p735_p7), %s198_s23, 4294965248  ;;  %p430_p13 = scmp.ne.s32.totalorder %s661_s12, 0 }
  0x23   : > { %232 = sbr.rel (%p430_p13) target bundleno = 42 (0x2a), region = 40 }
  0x28   : > { %v673_v0 = vmov 0.0  }
  0x29   : > { %233 = vst [vmem:[#allocation7] sm:$0xff] %v673_v0 }
  0x2a PF: > { %v234_v1 = vld [vmem:[%s769_s28] sm:$0xff]  ;;  %v235_v2 = vld [vmem:[%s769_s28 + $0x8] sm:$0xff]  ;;  %v236_v3 = vld [vmem:[%s769_s28 + $0x10] sm:$0xff]  ;;  %s674_s12 = smov [#allocation7]   ;;  %s329_s3 = sshll.u32 %s839_s2, 4  ;;  %s330_s3 = int_to_ptr.hbm [resolvable:$true] %s329_s3 }
  0x2b   : > { %v237_v4 = vld [vmem:[%s769_s28 + $0x18] sm:$0xff]  ;;  %v238_v5 = vld [vmem:[%s769_s28 + $0x20] sm:$0xff]  ;;  %v243_v7 = vld [vmem:[%s775_s24 + $0x8] sm:$0xff]  ;;  %s327_s20 = sshll.u32 %s674_s12, 4  ;;  %p469_p0 = scmp.eq.s32.totalorder %s418_s15, 7  ;;  %s328_s20 = int_to_ptr.vmem [resolvable:$true] %s327_s20 }
  0x2c   : > { %v242_v6 = vld [vmem:[%s775_s24] sm:$0xff]  ;;  %v244_v8 = vld [vmem:[%s775_s24 + $0x10] sm:$0xff]  ;;  %v245_v9 = vld [vmem:[%s775_s24 + $0x18] sm:$0xff]  ;;  %v251_v12 = vsub.f32 %v235_v2, %v243_v7 }
  0x2d   : > { %v250_v10 = vsub.f32 %v234_v1, %v242_v6  ;;  %v246_v11 = vld [vmem:[%s775_s24 + $0x20] sm:$0xff]  ;;  %v252_v13 = vsub.f32 %v236_v3, %v244_v8  ;;  %v253_v14 = vsub.f32 %v237_v4, %v245_v9  ;;  %v239_v15 = vld [vmem:[%s769_s28 + $0x28] sm:$0xff]  ;;  %v240_v18 = vld [vmem:[%s769_s28 + $0x30] sm:$0xff] }
  0x2e   : > { %v247_v16 = vld [vmem:[%s775_s24 + $0x28] sm:$0xff]  ;;  %v254_v19 = vsub.f32 %v238_v5, %v246_v11  ;;  %v259_v20 = vmul.f32 %v251_v12, %v251_v12  ;;  %v431_v22 = vld [vmem:[%s769_s28 + $0x40] sm:$0xff]  ;;  %v433_v24 = vld [vmem:[%s769_s28 + $0x50] sm:$0xff] }
  0x2f   : > { %v258_v17 = vmul.f32 %v250_v10, %v250_v10  ;;  %v260_v21 = vmul.f32 %v252_v13, %v252_v13  ;;  %v432_v23 = vld [vmem:[%s769_s28 + $0x48] sm:$0xff]  ;;  %v248_v25 = vld [vmem:[%s775_s24 + $0x30] sm:$0xff]  ;;  %v434_v26 = vld [vmem:[%s769_s28 + $0x58] sm:$0xff]  ;;  %v255_v28 = vsub.f32 %v239_v15, %v247_v16  ;;  %v261_v29 = vmul.f32 %v253_v14, %v253_v14 }
  0x30   : > { %v435_v27 = vld [vmem:[%s769_s28 + $0x60] sm:$0xff]  ;;  %v440_v32 = vld [vmem:[%s775_s24 + $0x48] sm:$0xff]  ;;  %v441_v33 = vld [vmem:[%s775_s24 + $0x50] sm:$0xff]  ;;  %v262_v39 = vmul.f32 %v254_v19, %v254_v19  ;;  %v256_v46 = vsub.f32 %v240_v18, %v248_v25 }
  0x31   : > { %v266_v30 = vadd.f32 %v259_v20, %v258_v17  ;;  %v439_v31 = vld [vmem:[%s775_s24 + $0x40] sm:$0xff]  ;;  %v442_v34 = vld [vmem:[%s775_s24 + $0x58] sm:$0xff]  ;;  %v293_v37 = vsub.f32 %v432_v23, %v440_v32  ;;  %v294_v38 = vsub.f32 %v433_v24, %v441_v33  ;;  %v436_v41 = vld [vmem:[%s769_s28 + $0x68] sm:$0xff]  ;;  %v263_v50 = vmul.f32 %v255_v28, %v255_v28 }
  0x32   : > { %v443_v35 = vld [vmem:[%s775_s24 + $0x60] sm:$0xff]  ;;  %v292_v36 = vsub.f32 %v431_v22, %v439_v31  ;;  %v444_v42 = vld [vmem:[%s775_s24 + $0x68] sm:$0xff]  ;;  %v295_v43 = vsub.f32 %v434_v26, %v442_v34  ;;  %v241_v44 = vld [vmem:[%s769_s28 + $0x38] sm:$0xff]  ;;  %v264_v62 = vmul.f32 %v256_v46, %v256_v46 }
  0x33   : > { %v267_v40 = vadd.f32 %v266_v30, %v260_v21  ;;  %v249_v45 = vld [vmem:[%s775_s24 + $0x38] sm:$0xff]  ;;  %v296_v47 = vsub.f32 %v435_v27, %v443_v35  ;;  %v301_v49 = vmul.f32 %v293_v37, %v293_v37  ;;  %v437_v52 = vld [vmem:[%s769_s28 + $0x70] sm:$0xff]  ;;  %v302_v54 = vmul.f32 %v294_v38, %v294_v38  ;;  %v316_v15 = vld [vmem:[#allocation7] sm:$0xff] }
  0x34   : > { %v300_v48 = vmul.f32 %v292_v36, %v292_v36  ;;  %v445_v53 = vld [vmem:[%s775_s24 + $0x70] sm:$0xff]  ;;  %v297_v55 = vsub.f32 %v436_v41, %v444_v42  ;;  %v303_v56 = vmul.f32 %v295_v43, %v295_v43  ;;  %v257_v58 = vsub.f32 %v241_v44, %v249_v45  ;;  %v438_v60 = vld [vmem:[%s769_s28 + $0x78] sm:$0xff] }
  0x35   : > { %v268_v51 = vadd.f32 %v267_v40, %v261_v29  ;;  %v446_v61 = vld [vmem:[%s775_s24 + $0x78] sm:$0xff]  ;;  %v298_v63 = vsub.f32 %v437_v52, %v445_v53  ;;  %v304_v0 = vmul.f32 %v296_v47, %v296_v47 }
  0x36   : > { %v308_v57 = vadd.f32 %v301_v49, %v300_v48  ;;  %v299_v3 = vsub.f32 %v438_v60, %v446_v61  ;;  %v305_v4 = vmul.f32 %v297_v55, %v297_v55  ;;  %v265_v6 = vmul.f32 %v257_v58, %v257_v58 }
  0x37   : > { %v269_v59 = vadd.f32 %v268_v51, %v262_v39  ;;  %v306_v8 = vmul.f32 %v298_v63, %v298_v63 }
  0x38   : > { %v309_v1 = vadd.f32 %v308_v57, %v302_v54  ;;  %v307_v10 = vmul.f32 %v299_v3, %v299_v3 }
  0x39   : > { %v270_v2 = vadd.f32 %v269_v59, %v263_v50 }
  0x3a   : > { %v310_v5 = vadd.f32 %v309_v1, %v303_v56 }
  0x3b   : > { %v271_v7 = vadd.f32 %v270_v2, %v264_v62 }
  0x3c   : > { %v311_v9 = vadd.f32 %v310_v5, %v304_v0 }
  0x3d   : > { %v272_v12 = vadd.f32 %v271_v7, %v265_v6 }
  0x3e   : > { %v312_v11 = vadd.f32 %v311_v9, %v305_v4 }
  0x40   : > { %v313_v13 = vadd.f32 %v312_v11, %v306_v8 }
  0x42   : > { %v314_v14 = vadd.f32 %v313_v13, %v307_v10 }
  0x44   : > { %v315_v16 = vadd.f32 %v314_v14, %v272_v12 }
  0x46   : > { %v317_v17 = vadd.f32 %v316_v15, %v315_v16 }
  0x48   : > { %318 = vst [vmem:[#allocation7] sm:$0xff] %v317_v17 }
  0x49   : > { %458 = dma.vmem_to_hbm [thread:$0]  (%p469_p0), %s328_s20, 128, %s330_s3, [#allocation4]  }
  0x4a   : > { %644 = dma.done.wait (%p469_p0), [#allocation4], 128  }
  0x4b   : > { %646 = vsyncadd (%p469_p0), [#allocation4], 4294967168 }
  0x4c PF: > { %s19_s14 = sadd.s32 1, %s669_s14   ;;  %s843_s9 = smov %s653_s10 }
  0x4d   : > { %p16_p1 = scmp.ge.s32.totalorder %s19_s14, 10   ;;  %s844_s10 = smov %s657_s11 }
  0x4e   : > { %s845_s11 = smov %s741_s21  ;;  %s846_s12 = smov %s665_s13 }
  0x4f   : > { %s847_s13 = smov %s849_s16  ;;  %18 = sbr.rel (!%p16_p1) target bundleno = 7 (0x7), region = 85 }
  0x54   :  { %343 = vsyncpa [#allocation3], 1 }
  0x55   :  { %345 = vsyncpa [#allocation3 + $0x1], 1 }
  0x56   :  { %346 = vsyncpa [#allocation6], 1 }
  0x57   :  { %348 = vsyncpa [#allocation6 + $0x1], 1 }
  0x58   :  { %349 = vsyncpa [#allocation4], 1 }
  0x59   :  { %351 = vsyncpa [#allocation4 + $0x1], 1 }

</bundles_post_ra>
